<compile_context>
chip_gen: v7x
topology: tpu7x:2x2x1
jax: 0.10.0
libtpu: 0.0.40
codegen_flags: <defaults>
</compile_context>

<pallas_src>
import functools

import numpy as np
import jax
import jax.numpy as jnp
from jax.experimental import pallas as pl
from jax.experimental.pallas import tpu as pltpu


def _round_up(n, m):
    return ((n + m - 1) // m) * m


def _fused_conv_relu_max_kernel(x_ref, w_ref, b_ref, o_ref, *, n_pos, n_out_pad):
    """One row-tile of the fused multi-filter char-CNN.

    x_ref: (TR, W*C)              f32 row tile (one row = one (batch, word) pair)
    w_ref: (W*C, n_pos*n_out_pad) bf16 block-banded weights, position-major cols
    b_ref: (1, n_out_pad)         f32 concatenated biases (zero in pad lanes)
    o_ref: (TR, n_out_pad)        f32 output: relu(max_pos(conv) + bias)
    """
    # Cast to bf16 in-kernel (avoids a separate HBM-materialized bf16 copy).
    x = x_ref[...].astype(jnp.bfloat16)
    # Per conv-position matmul with a running max; each slice of the weight is
    # 128-lane aligned (n_out_pad % 128 == 0), so slices/stores are unmasked.
    m = jnp.dot(x, w_ref[:, 0:n_out_pad], preferred_element_type=jnp.float32)
    for p in range(1, n_pos):
        y = jnp.dot(x, w_ref[:, p * n_out_pad:(p + 1) * n_out_pad],
                    preferred_element_type=jnp.float32)
        m = jnp.maximum(m, y)
    # Bias + relu AFTER the max (equivalent: max is duplicate-invariant, relu
    # monotone, bias constant across positions) -> n_pos-times cheaper epilogue.
    o_ref[...] = jnp.maximum(m + b_ref[...], 0.0).astype(o_ref.dtype)


def pack_multi_conv1d_params(params, in_width, in_channels, *, lane=128):
    """Build the block-banded bf16 weight (W*C, P*Gp) and fused f32 bias (1, Gp).

    params: list of (w, b) with w in PyTorch layout (O, C, h), b of shape (O,).
    Column (p*Gp + off_f + o) computes filter-f / channel-o conv output at width
    position p; positions p >= w_out_f duplicate position 0 so the subsequent
    max over positions is unaffected.  Gp = round_up(sum(O_f), 128) so every
    per-position column group (and the output store) is lane-dense.
    Done once in numpy (static per model) -> no per-call scatter HLOs / casts.
    """
    W, C = in_width, in_channels
    o_sizes = [int(w.shape[0]) for w, _ in params]
    assert len(set(o_sizes)) == 1, "torch.cat(outs, 2) requires equal filter_sizes"
    G = sum(o_sizes)
    Gp = _round_up(G, lane)
    heights = [int(w.shape[2]) for w, _ in params]
    for h in heights:
        if h > W:
            raise ValueError(f"filter width {h} exceeds in_width {W}")
    w_outs = [W - h + 1 for h in heights]
    P = max(w_outs)

    w_all = np.zeros((W * C, P * Gp), np.float32)
    bias = np.zeros((1, Gp), np.float32)
    off = 0
    for (w, b), w_out in zip(params, w_outs):
        w_np = np.asarray(w, np.float32)
        b_np = np.asarray(b, np.float32)
        O_f, C_f, h = w_np.shape
        assert C_f == C
        wk = np.transpose(w_np, (2, 1, 0)).reshape(h * C, O_f)   # [(k, c), o]
        for p in range(P):
            src = p if p < w_out else 0        # duplicate pos 0 for padding
            w_all[src * C:src * C + h * C, p * Gp + off:p * Gp + off + O_f] = wk
        bias[0, off:off + O_f] = b_np
        off += O_f

    packed = {
        "w_all": jnp.asarray(w_all, jnp.bfloat16),   # pre-cast once
        "bias": jnp.asarray(bias, jnp.float32),
        "n_pos": P,
        "n_out": G,
        "n_out_pad": Gp,
        "n_filters": len(params),
        "out_ch": o_sizes[0],
    }
    return packed


def _fused_multi_conv(x_rows, w_all, bias, *, n_pos, n_out_pad, block_rows):
    rows, wc = x_rows.shape
    kernel = functools.partial(_fused_conv_relu_max_kernel,
                               n_pos=n_pos, n_out_pad=n_out_pad)
    return pl.pallas_call(
        kernel,
        out_shape=jax.ShapeDtypeStruct((rows, n_out_pad), jnp.float32),
        grid_spec=pltpu.PrefetchScalarGridSpec(
            num_scalar_prefetch=0,
            grid=(rows // block_rows,),
            in_specs=[
                pl.BlockSpec((block_rows, wc), lambda i: (i, 0)),        # x (f32)
                pl.BlockSpec((wc, n_pos * n_out_pad), lambda i: (0, 0)),  # weights
                pl.BlockSpec((1, n_out_pad), lambda i: (0, 0)),           # bias
            ],
            out_specs=pl.BlockSpec((block_rows, n_out_pad), lambda i: (i, 0)),
        ),
        compiler_params=pltpu.CompilerParams(
            dimension_semantics=("parallel",)),
    )(x_rows, w_all, bias)


def init_multi_conv1d_params(in_channels, filter_sizes, heights, key):
    """Deterministic init matching nn.Conv2d(in_c, out_c, (1, h)) defaults."""
    params = []
    for idx, (fs, h) in enumerate(zip(filter_sizes, heights)):
        if fs == 0:
            continue
        kw, kb = jax.random.split(jax.random.fold_in(key, idx))
        fan_in = in_channels * 1 * h
        bound = 1.0 / (fan_in ** 0.5)
        # PyTorch weight layout (O, C, 1, h) with the kernel-height dim squeezed.
        w = jax.random.uniform(kw, (fs, in_channels, h), jnp.float32, -bound, bound)
        b = jax.random.uniform(kb, (fs,), jnp.float32, -bound, bound)
        params.append((w, b))
    return params


def multi_conv1d(x, packed, *, block_rows=2048):
    """Mirrors MultiConv1D.forward with padding='VALID'.

    x:      (B, in_height, in_width, in_channels) float32
    packed: result of pack_multi_conv1d_params(params, in_width, in_channels)
    returns: (B, out_channels, n_active_filters * in_height)
    """
    B, H, W, C = x.shape
    n_filters = packed["n_filters"]
    out_ch = packed["out_ch"]
    n_out = packed["n_out"]

    # Fold (batch, in_height) into rows; flatten (in_width, in_channels) into
    # the contraction dim.  Both reshapes are free (contiguous layout).
    rows = B * H
    x_rows = x.reshape(rows, W * C)

    # Row tile: multiple of 8, capped at block_rows, but never so large that the
    # grid collapses to a single program (>=2 programs -> v7x dual-TC sharding).
    tr = max(8, min(block_rows, _round_up((rows + 1) // 2, 8)))
    rows_p = _round_up(rows, tr)
    if rows_p != rows:
        x_rows = jnp.pad(x_rows, ((0, rows_p - rows), (0, 0)))

    out_rows = _fused_multi_conv(
        x_rows, packed["w_all"], packed["bias"],
        n_pos=packed["n_pos"], n_out_pad=packed["n_out_pad"], block_rows=tr)

    out_rows = out_rows[:rows, :n_out]
    # (B*H, nF*O) -> PyTorch layout (B, O, nF*H).
    # TODO(synk): this final permute stays a single cheap XLA transpose; writing
    # the (B, O, nF*H) layout directly from the kernel would force sub-(8,128)
    # output blocks at these shapes.
    out = out_rows.reshape(B, H, n_filters, out_ch)
    return out.transpose(0, 3, 2, 1).reshape(B, out_ch, n_filters * H)


def _reference_multi_conv1d(x, params):
    """Pure-JAX f32 reference of MultiConv1D.forward (padding='VALID')."""
    B, H, W, C = x.shape
    outs = []
    for w, b in params:                        # w: (O, C, h)
        O, _, h = w.shape
        w_out = W - h + 1
        acc = jnp.zeros((B, H, w_out, O), jnp.float32)
        for k in range(h):
            acc += jnp.einsum('bhwc,oc->bhwo', x[:, :, k:k + w_out, :], w[:, :, k])
        acc = jax.nn.relu(acc + b)
        out = jnp.max(acc, axis=2)             # (B, H, O)
        outs.append(jnp.transpose(out, (0, 2, 1)))   # (B, O, H)
    return jnp.concatenate(outs, axis=2)


if __name__ == "__main__":
    key = jax.random.PRNGKey(0)
    kx, kp = jax.random.split(key)

    # Small shapes consistent with the module's NHWC input:
    # batch=2, in_height (words)=8, in_width (chars)=16, in_channels (char emb)=8
    B, H, W, C = 2, 8, 16, 8
    x = jax.random.normal(kx, (B, H, W, C), jnp.float32)

    filter_sizes = [8, 8]     # equal, so torch.cat(outs, 2) is valid
    heights = [3, 5]

    params = init_multi_conv1d_params(C, filter_sizes, heights, kp)
    packed = pack_multi_conv1d_params(params, W, C)   # once per model, not per call

    out = multi_conv1d(x, packed)
    out = jax.block_until_ready(out)

    ref = _reference_multi_conv1d(x, params)

    assert out.shape == (B, filter_sizes[0], len(filter_sizes) * H), out.shape
    # bf16 MXU inputs (f32 accumulation) vs an all-f32 reference.
    max_err = float(jnp.max(jnp.abs(out - ref)))
    assert jnp.allclose(out, ref, atol=2e-2, rtol=2e-2), max_err

    print("KERNEL_OK")
</pallas_src>

<mosaic_0001>
module attributes {stable_mosaic.version = 11 : i64} {
  func.func @_fused_conv_relu_max_kernel(%arg0: i32, %arg1: memref<8x128xf32, #tpu.memory_space<vmem>>, %arg2: memref<128x1792xbf16, #tpu.memory_space<vmem>>, %arg3: memref<1x128xf32, #tpu.memory_space<vmem>>, %arg4: memref<8x128xf32, #tpu.memory_space<vmem>>) attributes {dimension_semantics = [#tpu.dimension_semantics<parallel>], iteration_bounds = array<i64: 2>, scalar_prefetch = 0 : i64, scratch_operands = 0 : i64, tpu.core_type = #tpu.core_type<tc>, window_params = [{transform_indices = @transform_0, window_bounds = array<i64: 8, 128>}, {pipeline_mode = #tpu.pipeline_mode<synchronous>, transform_indices = @transform_1, window_bounds = array<i64: 128, 1792>}, {pipeline_mode = #tpu.pipeline_mode<synchronous>, transform_indices = @transform_2, window_bounds = array<i64: 1, 128>}, {transform_indices = @transform_3, window_bounds = array<i64: 8, 128>}]} {
    %c0 = arith.constant 0 : index
    %c0_0 = arith.constant 0 : index
    %0 = vector.load %arg1[%c0, %c0_0] : memref<8x128xf32, #tpu.memory_space<vmem>>, vector<8x128xf32>
    %1 = arith.truncf %0 : vector<8x128xf32> to vector<8x128xbf16>
    %c0_1 = arith.constant 0 : index
    %c0_2 = arith.constant 0 : index
    %2 = vector.load %arg2[%c0_1, %c0_2] : memref<128x1792xbf16, #tpu.memory_space<vmem>>, vector<128x128xbf16>
    %cst = arith.constant dense<0.000000e+00> : vector<8x128xf32>
    %3 = tpu.matmul %1, %2, %cst {dimension_numbers = #tpu.dot_dimension_numbers<[1], [0], [0], [1], [0, 0, 1, 1], [], []>} : vector<8x128xbf16>, vector<128x128xbf16>, vector<8x128xf32> -> vector<8x128xf32>
    %c0_3 = arith.constant 0 : index
    %c128 = arith.constant 128 : index
    %4 = vector.load %arg2[%c0_3, %c128] : memref<128x1792xbf16, #tpu.memory_space<vmem>>, vector<128x128xbf16>
    %cst_4 = arith.constant dense<0.000000e+00> : vector<8x128xf32>
    %5 = tpu.matmul %1, %4, %cst_4 {dimension_numbers = #tpu.dot_dimension_numbers<[1], [0], [0], [1], [0, 0, 1, 1], [], []>} : vector<8x128xbf16>, vector<128x128xbf16>, vector<8x128xf32> -> vector<8x128xf32>
    %6 = arith.maximumf %3, %5 : vector<8x128xf32>
    %c0_5 = arith.constant 0 : index
    %c256 = arith.constant 256 : index
    %7 = vector.load %arg2[%c0_5, %c256] : memref<128x1792xbf16, #tpu.memory_space<vmem>>, vector<128x128xbf16>
    %cst_6 = arith.constant dense<0.000000e+00> : vector<8x128xf32>
    %8 = tpu.matmul %1, %7, %cst_6 {dimension_numbers = #tpu.dot_dimension_numbers<[1], [0], [0], [1], [0, 0, 1, 1], [], []>} : vector<8x128xbf16>, vector<128x128xbf16>, vector<8x128xf32> -> vector<8x128xf32>
    %9 = arith.maximumf %6, %8 : vector<8x128xf32>
    %c0_7 = arith.constant 0 : index
    %c384 = arith.constant 384 : index
    %10 = vector.load %arg2[%c0_7, %c384] : memref<128x1792xbf16, #tpu.memory_space<vmem>>, vector<128x128xbf16>
    %cst_8 = arith.constant dense<0.000000e+00> : vector<8x128xf32>
    %11 = tpu.matmul %1, %10, %cst_8 {dimension_numbers = #tpu.dot_dimension_numbers<[1], [0], [0], [1], [0, 0, 1, 1], [], []>} : vector<8x128xbf16>, vector<128x128xbf16>, vector<8x128xf32> -> vector<8x128xf32>
    %12 = arith.maximumf %9, %11 : vector<8x128xf32>
    %c0_9 = arith.constant 0 : index
    %c512 = arith.constant 512 : index
    %13 = vector.load %arg2[%c0_9, %c512] : memref<128x1792xbf16, #tpu.memory_space<vmem>>, vector<128x128xbf16>
    %cst_10 = arith.constant dense<0.000000e+00> : vector<8x128xf32>
    %14 = tpu.matmul %1, %13, %cst_10 {dimension_numbers = #tpu.dot_dimension_numbers<[1], [0], [0], [1], [0, 0, 1, 1], [], []>} : vector<8x128xbf16>, vector<128x128xbf16>, vector<8x128xf32> -> vector<8x128xf32>
    %15 = arith.maximumf %12, %14 : vector<8x128xf32>
    %c0_11 = arith.constant 0 : index
    %c640 = arith.constant 640 : index
    %16 = vector.load %arg2[%c0_11, %c640] : memref<128x1792xbf16, #tpu.memory_space<vmem>>, vector<128x128xbf16>
    %cst_12 = arith.constant dense<0.000000e+00> : vector<8x128xf32>
    %17 = tpu.matmul %1, %16, %cst_12 {dimension_numbers = #tpu.dot_dimension_numbers<[1], [0], [0], [1], [0, 0, 1, 1], [], []>} : vector<8x128xbf16>, vector<128x128xbf16>, vector<8x128xf32> -> vector<8x128xf32>
    %18 = arith.maximumf %15, %17 : vector<8x128xf32>
    %c0_13 = arith.constant 0 : index
    %c768 = arith.constant 768 : index
    %19 = vector.load %arg2[%c0_13, %c768] : memref<128x1792xbf16, #tpu.memory_space<vmem>>, vector<128x128xbf16>
    %cst_14 = arith.constant dense<0.000000e+00> : vector<8x128xf32>
    %20 = tpu.matmul %1, %19, %cst_14 {dimension_numbers = #tpu.dot_dimension_numbers<[1], [0], [0], [1], [0, 0, 1, 1], [], []>} : vector<8x128xbf16>, vector<128x128xbf16>, vector<8x128xf32> -> vector<8x128xf32>
    %21 = arith.maximumf %18, %20 : vector<8x128xf32>
    %c0_15 = arith.constant 0 : index
    %c896 = arith.constant 896 : index
    %22 = vector.load %arg2[%c0_15, %c896] : memref<128x1792xbf16, #tpu.memory_space<vmem>>, vector<128x128xbf16>
    %cst_16 = arith.constant dense<0.000000e+00> : vector<8x128xf32>
    %23 = tpu.matmul %1, %22, %cst_16 {dimension_numbers = #tpu.dot_dimension_numbers<[1], [0], [0], [1], [0, 0, 1, 1], [], []>} : vector<8x128xbf16>, vector<128x128xbf16>, vector<8x128xf32> -> vector<8x128xf32>
    %24 = arith.maximumf %21, %23 : vector<8x128xf32>
    %c0_17 = arith.constant 0 : index
    %c1024 = arith.constant 1024 : index
    %25 = vector.load %arg2[%c0_17, %c1024] : memref<128x1792xbf16, #tpu.memory_space<vmem>>, vector<128x128xbf16>
    %cst_18 = arith.constant dense<0.000000e+00> : vector<8x128xf32>
    %26 = tpu.matmul %1, %25, %cst_18 {dimension_numbers = #tpu.dot_dimension_numbers<[1], [0], [0], [1], [0, 0, 1, 1], [], []>} : vector<8x128xbf16>, vector<128x128xbf16>, vector<8x128xf32> -> vector<8x128xf32>
    %27 = arith.maximumf %24, %26 : vector<8x128xf32>
    %c0_19 = arith.constant 0 : index
    %c1152 = arith.constant 1152 : index
    %28 = vector.load %arg2[%c0_19, %c1152] : memref<128x1792xbf16, #tpu.memory_space<vmem>>, vector<128x128xbf16>
    %cst_20 = arith.constant dense<0.000000e+00> : vector<8x128xf32>
    %29 = tpu.matmul %1, %28, %cst_20 {dimension_numbers = #tpu.dot_dimension_numbers<[1], [0], [0], [1], [0, 0, 1, 1], [], []>} : vector<8x128xbf16>, vector<128x128xbf16>, vector<8x128xf32> -> vector<8x128xf32>
    %30 = arith.maximumf %27, %29 : vector<8x128xf32>
    %c0_21 = arith.constant 0 : index
    %c1280 = arith.constant 1280 : index
    %31 = vector.load %arg2[%c0_21, %c1280] : memref<128x1792xbf16, #tpu.memory_space<vmem>>, vector<128x128xbf16>
    %cst_22 = arith.constant dense<0.000000e+00> : vector<8x128xf32>
    %32 = tpu.matmul %1, %31, %cst_22 {dimension_numbers = #tpu.dot_dimension_numbers<[1], [0], [0], [1], [0, 0, 1, 1], [], []>} : vector<8x128xbf16>, vector<128x128xbf16>, vector<8x128xf32> -> vector<8x128xf32>
    %33 = arith.maximumf %30, %32 : vector<8x128xf32>
    %c0_23 = arith.constant 0 : index
    %c1408 = arith.constant 1408 : index
    %34 = vector.load %arg2[%c0_23, %c1408] : memref<128x1792xbf16, #tpu.memory_space<vmem>>, vector<128x128xbf16>
    %cst_24 = arith.constant dense<0.000000e+00> : vector<8x128xf32>
    %35 = tpu.matmul %1, %34, %cst_24 {dimension_numbers = #tpu.dot_dimension_numbers<[1], [0], [0], [1], [0, 0, 1, 1], [], []>} : vector<8x128xbf16>, vector<128x128xbf16>, vector<8x128xf32> -> vector<8x128xf32>
    %36 = arith.maximumf %33, %35 : vector<8x128xf32>
    %c0_25 = arith.constant 0 : index
    %c1536 = arith.constant 1536 : index
    %37 = vector.load %arg2[%c0_25, %c1536] : memref<128x1792xbf16, #tpu.memory_space<vmem>>, vector<128x128xbf16>
    %cst_26 = arith.constant dense<0.000000e+00> : vector<8x128xf32>
    %38 = tpu.matmul %1, %37, %cst_26 {dimension_numbers = #tpu.dot_dimension_numbers<[1], [0], [0], [1], [0, 0, 1, 1], [], []>} : vector<8x128xbf16>, vector<128x128xbf16>, vector<8x128xf32> -> vector<8x128xf32>
    %39 = arith.maximumf %36, %38 : vector<8x128xf32>
    %c0_27 = arith.constant 0 : index
    %c1664 = arith.constant 1664 : index
    %40 = vector.load %arg2[%c0_27, %c1664] : memref<128x1792xbf16, #tpu.memory_space<vmem>>, vector<128x128xbf16>
    %cst_28 = arith.constant dense<0.000000e+00> : vector<8x128xf32>
    %41 = tpu.matmul %1, %40, %cst_28 {dimension_numbers = #tpu.dot_dimension_numbers<[1], [0], [0], [1], [0, 0, 1, 1], [], []>} : vector<8x128xbf16>, vector<128x128xbf16>, vector<8x128xf32> -> vector<8x128xf32>
    %42 = arith.maximumf %39, %41 : vector<8x128xf32>
    %c0_29 = arith.constant 0 : index
    %c0_30 = arith.constant 0 : index
    %43 = vector.load %arg3[%c0_29, %c0_30] : memref<1x128xf32, #tpu.memory_space<vmem>>, vector<1x128xf32>
    %44 = vector.broadcast %43 : vector<1x128xf32> to vector<8x128xf32>
    %45 = arith.addf %42, %44 : vector<8x128xf32>
    %cst_31 = arith.constant 0.000000e+00 : f32
    %46 = vector.broadcast %cst_31 : f32 to vector<8x128xf32>
    %47 = arith.maximumf %45, %46 : vector<8x128xf32>
    %c0_32 = arith.constant 0 : index
    %c0_33 = arith.constant 0 : index
    %48 = vector.load %arg4[%c0_32, %c0_33] : memref<8x128xf32, #tpu.memory_space<vmem>>, vector<8x128xf32>
    tpu.vector_store %arg4[%c0_32, %c0_33], %47 {strides = array<i32>} : memref<8x128xf32, #tpu.memory_space<vmem>>, vector<8x128xf32>,
    return
  }
  func.func @transform_0(%arg0: i32) -> (i32, i32) {
    %c0_i32 = arith.constant 0 : i32
    %c0_i32_0 = arith.constant 0 : i32
    return %arg0, %c0_i32 : i32, i32
  }
  func.func @transform_1(%arg0: i32) -> (i32, i32) {
    %c0_i32 = arith.constant 0 : i32
    %c0_i32_0 = arith.constant 0 : i32
    %c0_i32_1 = arith.constant 0 : i32
    return %c0_i32, %c0_i32_0 : i32, i32
  }
  func.func @transform_2(%arg0: i32) -> (i32, i32) {
    %c0_i32 = arith.constant 0 : i32
    %c0_i32_0 = arith.constant 0 : i32
    %c0_i32_1 = arith.constant 0 : i32
    return %c0_i32, %c0_i32_0 : i32, i32
  }
  func.func @transform_3(%arg0: i32) -> (i32, i32) {
    %c0_i32 = arith.constant 0 : i32
    %c0_i32_0 = arith.constant 0 : i32
    return %arg0, %c0_i32 : i32, i32
  }
}

</mosaic_0001>

<bundles_post_ra>
// kernel: tpu_custom_call.1
= control target key start
LH: loop header
LB: loop body
LE: loop exit
PB: predicated region body
PF: predicated region fallthrough
CT: control target
= control target key end

     0   :  { %8 = vsyncpa [#allocation3], 0  ;;  %s3002_s0 = inlined_call_operand.hbm [shape: f32[16,128], index: 0, kind: input, shape index: {}]   ;;  %s3003_s1 = inlined_call_operand.hbm [shape: bf16[128,1792], index: 1, kind: input, shape index: {}]   ;;  %s3004_s2 = inlined_call_operand.vmem [shape: f32[1,128], index: 2, kind: input, shape index: {}]   ;;  %s3005_s3 = inlined_call_operand.hbm [shape: f32[16,128], index: 3, kind: output, shape index: {}]  }
   0x1   :  { %10 = vsyncpa [#allocation3 + $0x1], 0 }
   0x2   :  { %11 = vsyncpa [#allocation6], 0 }
   0x3   :  { %12 = vsyncpa [#allocation4], 0 }
   0x4   :  { %14 = vsyncpa [#allocation4 + $0x1], 0  ;;  %s2640_s12 = smov 0   ;;  %s2642_s13 = smov 0  }
   0x5   :  { %s2644_s14 = smov 0   ;;  %s2646_s15 = smov 0  }
   0x6 LB: > { %s2661_s16 = sadd.s32 4294967295, %s2611_s15   ;;  %s1777_s17 = sadd.s32 4294967294, %s2611_s15   ;;  %s2611_s15 = sphi %s2646_s15, %s3025_s15   ;;  %s2607_s14 = sphi %s2644_s14, %s3024_s14   ;;  %s2603_s13 = sphi %s2642_s13, %s3023_s13   ;;  %s2599_s12 = sphi %s2640_s12, %s3022_s12  }
   0x7   : > { %p40_p0 = scmp.ne.s32.totalorder %s2603_s13, %s2599_s12  ;;  %p3006_p1 = scmp.eq.s32.totalorder %s2661_s16, 0 }
   0x8   : > { %p112_p3 = scmp.eq.s32.totalorder %s1777_s17, 1  ;;  %p1778_p5 = scmp.ge.s32.totalorder %s2611_s15, 1 }
   0x9   : > { %p2670_p4 = por %p3006_p1, %p40_p0  ;;  %p119_p7 = scmp.lt.s32.totalorder %s2611_s15, 3 }
   0xa   : > { %p2675_p6 = por %p112_p3, %p40_p0  ;;  %s2613_s21 = smov [#allocation5]  }
   0xb   : > { %s3009_s18 = scalar_select %p2670_p4, 1, 0 }
   0xc   : > { %s3010_s19 = scalar_select %p2675_p6, 1, 0 }
   0xd   : > { %p2680_p8 = pnand %p1778_p5, %p119_p7  ;;  %s131_s22 = sshll.u32 %s2613_s21, 4  ;;  %s2684_s22 = int_to_ptr.vmem [resolvable:$true] %s131_s22 }
   0xe   : > { %s2696_s24 = sadd.s32 1, %s2611_s15   ;;  %s27_s25 = sadd.s32 1, %s2607_s14 }
   0xf   : > { %s3011_s20 = scalar_select %p2680_p8, 1, 0 }
  0x10   : > { %p2318_p9 = pneg %p2680_p8  ;;  %s24_s26 = ssub.s32 %s2611_s15, %s2696_s24 }
  0x11   : > { %s2483_s29 = scalar_lea.hbm %s3003_s1, 14336 }
  0x12   : > { %p2691_p11 = pnand %p2318_p9, %p3006_p1  ;;  %p2484_p12 = scmp.ne.s32.totalorder %s3003_s1, %s2483_s29 }
  0x13   : > { %p2490_p5 = scmp.lt.u32.totalorder %s2483_s29, %s3003_s1 }
  0x14   : > { %p2485_p13 = pneg %p2691_p11 }
  0x16   : > { %p2486_p0 = pnand %p2485_p13, %p2484_p12 }
  0x18   : > { %p2487_p3 = pneg %p2486_p0 }
  0x1a   : > { %p2492_p7 = pnand %p2490_p5, %p2487_p3 }
  0x1c   : > { %2495 = shalt.err (!%p2492_p7)
}
  0x1d   : > { %s2496_s7 = scalar_lea.vmem %s2684_s22, 14336  ;;  %p2504_p2 = scmp.lt.s32.totalorder %s2684_s22, %s2684_s22 }
  0x1e   : > { %p2497_p9 = scmp.ne.s32.totalorder %s2684_s22, %s2496_s7  ;;  %p2505_p6 = scmp.lt.s32.totalorder %s2496_s7, %s2496_s7 }
  0x20   : > { %p2499_p10 = pnand %p2497_p9, %p2485_p13  ;;  %p2506_p4 = por %p2505_p6, %p2504_p2 }
  0x22   : > { %p2500_p1 = pneg %p2499_p10 }
  0x24   : > { %p2507_p8 = pnand %p2506_p4, %p2500_p1 }
  0x26   : > { %2510 = shalt.err (!%p2507_p8)
}
  0x27   : > { %s2614_s8 = smov 896   ;;  %s2615_s9 = smov 56  }
  0x28   : > { %2321 = dma.hbm_to_vmem [thread:$0]  (!%p2691_p11), %s3003_s1, 14336, %s2684_s22, [#allocation6], %s2614_s8, %s2614_s8, %s2615_s9  }
  0x29   : > { %p25_p2 = scmp.eq.s32.totalorder %s24_s26, 0  ;;  %p34_p1 = scmp.ne.s32.totalorder %s2607_s14, %s2603_s13 }
  0x2a   : > { %p35_p4 = scmp.eq.s32.totalorder %s2611_s15, 0  ;;  %p2331_p6 = scmp.lt.s32.totalorder %s2611_s15, 2 }
  0x2b   : > { %s2727_s17 = scalar_select %p25_p2, %s2607_s14, %s27_s25  }
  0x2c   : > { %p36_p8 = por %p35_p4, %p34_p1  ;;  %p3013_p10 = scmp.eq.s32.totalorder %s2661_s16, 1 }
  0x2d   : > { %s148_s27 = sand.u32 1, %s2607_s14   ;;  %s1782_s28 = sshll.u32 %s2611_s15, 7 }
  0x2e   : > { %p2731_p12 = por %p3013_p10, %p34_p1  ;;  %s1781_s29 = sshll.u32 %s148_s27, 3 }
  0x2f   : > { %s2740_s4 = scalar_lea.hbm %s3002_s0, %s1782_s28  ;;  %s152_s22 = scalar_lea.vmem [#allocation2], %s1781_s29 }
  0x30   : > { %s159_s25 = sshll.u32 %s152_s22, 4  ;;  %p2742_p11 = pnand %p2331_p6, %p36_p8  ;;  %s2746_s25 = int_to_ptr.vmem [resolvable:$true] %s159_s25 }
  0x31   : > { %s149_s5 = scalar_lea.sflag [#allocation3], %s148_s27  ;;  %s2511_s6 = scalar_lea.hbm %s2740_s4, 128 }
  0x32   : > { %p2512_p13 = scmp.ne.s32.totalorder %s2740_s4, %s2511_s6  ;;  %p2513_p0 = pneg %p2742_p11 }
  0x33   : > { %s2516_s9 = scalar_lea.hbm %s3002_s0, 256  ;;  %p2517_p7 = scmp.lt.u32.totalorder %s2740_s4, %s3002_s0 }
  0x34   : > { %p2514_p3 = pnand %p2513_p0, %p2512_p13  ;;  %p2518_p9 = scmp.lt.u32.totalorder %s2516_s9, %s2511_s6 }
  0x35   : > { %p2520_p1 = scmp.lt.u32.totalorder %s2511_s6, %s2740_s4 }
  0x36   : > { %p2515_p5 = pneg %p2514_p3  ;;  %p2519_p2 = por %p2518_p9, %p2517_p7 }
  0x38   : > { %p2521_p4 = por %p2520_p1, %p2519_p2 }
  0x3a   : > { %p2522_p6 = pnand %p2521_p4, %p2515_p5 }
  0x3c   : > { %2525 = shalt.err (!%p2522_p6)
}
  0x3d   : > { %s2526_s27 = scalar_lea.vmem %s2746_s25, 128  ;;  %s2616_s28 = smov [#allocation2]  }
  0x3e   : > { %p2527_p8 = scmp.ne.s32.totalorder %s2746_s25, %s2526_s27  ;;  %s2531_s29 = sshll.u32 %s2616_s28, 4  ;;  %s2532_s29 = int_to_ptr.vmem [resolvable:$false] %s2531_s29 }
  0x3f   : > { %s2533_s23 = scalar_lea.vmem %s2532_s29, 256  ;;  %p2534_p3 = scmp.lt.s32.totalorder %s2746_s25, %s2532_s29 }
  0x40   : > { %p2529_p10 = pnand %p2527_p8, %p2513_p0  ;;  %p2535_p7 = scmp.lt.s32.totalorder %s2533_s23, %s2526_s27 }
  0x42   : > { %p2530_p13 = pneg %p2529_p10  ;;  %p2536_p9 = por %p2535_p7, %p2534_p3 }
  0x44   : > { %p2537_p2 = pnand %p2536_p9, %p2530_p13 }
  0x46   : > { %2540 = shalt.err (!%p2537_p2)
}
  0x47   : > { %2325 = dma.hbm_to_vmem [thread:$0]  (!%p2742_p11), %s2740_s4, 128, %s2746_s25, %s149_s5  }
  0x48   : > { %p3016_p5 = scmp.ne.s32.totalorder %s3011_s20, 0 }
  0x49   : > { %s2776_s30 = sand.u32 (!%p3016_p5), 1, %s2603_s13   ;;  %p3017_p0 = scmp.ne.s32.totalorder (!%p3016_p5), %s3009_s18, 0 }
  0x4a   : > { %168 = sbr.rel (%p3016_p5) target bundleno = 545 (0x221), region = 32  ;;  %s1784_s22 = sshll.u32 (!%p3016_p5), %s2776_s30, 3 }
  0x4b   : > { %s171_s6 = scalar_lea.sflag (!%p3016_p5), [#allocation3], %s2776_s30  ;;  %s2782_s7 = scalar_lea.vmem (!%p3016_p5), [#allocation2], %s1784_s22 }
  0x51   : > { %2586 = dma.done.wait (%p3017_p0), %s171_s6, 128  }
  0x52   : > { %2588 = vsyncadd (%p3017_p0), %s171_s6, 4294967168  ;;  %p3018_p11 = scmp.eq.s32.totalorder %s2661_s16, 0 }
  0x54   : > { %2590 = dma.done.wait (%p3018_p11), [#allocation6], 14336   ;;  %p3019_p1 = pmov %p3018_p11 }
  0x55   : > { %v2617_v0 = vmov 0.0   ;;  %vm2618_vm0 = vmmov 0   ;;  %v2371_v1 = vld [vmem:[#allocation5] ss:$56 sps:$4 sm:$0xff]   ;;  %v2372_v2 = vld [vmem:[#allocation5 + $0x4] ss:$56 sps:$4 sm:$0xff]  }
  0x56   : > { %2592 = vsyncadd (%p3019_p1), [#allocation6], 4294952960  ;;  %2030 = vmatprep.subr.bf16.mxu0 %v2617_v0  ;;  %2050 = vmatprep.subr.bf16.mxu1 %v2617_v0  ;;  %v2373_v3 = vld [vmem:[#allocation5 + $0x70] ss:$56 sps:$4 sm:$0xff]   ;;  %v2374_v4 = vld [vmem:[#allocation5 + $0x74] ss:$56 sps:$4 sm:$0xff]  }
  0x57   : > { %2046 = vmatprep.mubr.msk.bf16.mxu0 %vm2618_vm0, %v2617_v0  ;;  %2066 = vmatprep.mubr.msk.bf16.mxu1 %vm2618_vm0, %v2617_v0  ;;  %v2375_v5 = vld [vmem:[#allocation5 + $0xe0] ss:$56 sps:$4 sm:$0xff]   ;;  %v2376_v6 = vld [vmem:[#allocation5 + $0xe4] ss:$56 sps:$4 sm:$0xff]   ;;  %v2377_v7 = vld [vmem:[#allocation5 + $0x150] ss:$56 sps:$4 sm:$0xff]  }
  0x58   : > { %2031 = vmatpush3.bf16.msra.mxu0 %v2371_v1  ;;  %2051 = vmatpush3.bf16.msra.mxu1 %v2372_v2  ;;  %v2378_v8 = vld [vmem:[#allocation5 + $0x154] ss:$56 sps:$4 sm:$0xff]   ;;  %v2379_v9 = vld [vmem:[#allocation5 + $0x1c0] ss:$56 sps:$4 sm:$0xff]   ;;  %v2380_v10 = vld [vmem:[#allocation5 + $0x1c4] ss:$56 sps:$4 sm:$0xff]  }
  0x59   : > { %2032 = vmatprep.subr.bf16.mxu0 %v2617_v0  ;;  %2052 = vmatprep.subr.bf16.mxu1 %v2617_v0  ;;  %v2381_v11 = vld [vmem:[#allocation5 + $0x230] ss:$56 sps:$4 sm:$0xff]   ;;  %v2382_v12 = vld [vmem:[#allocation5 + $0x234] ss:$56 sps:$4 sm:$0xff]   ;;  %v2383_v13 = vld [vmem:[#allocation5 + $0x2a0] ss:$56 sps:$4 sm:$0xff]  }
  0x5a   : > { %v2384_v14 = vld [vmem:[#allocation5 + $0x2a4] ss:$56 sps:$4 sm:$0xff]   ;;  %v2385_v15 = vld [vmem:[#allocation5 + $0x310] ss:$56 sps:$4 sm:$0xff]   ;;  %v2386_v17 = vld [vmem:[#allocation5 + $0x314] ss:$56 sps:$4 sm:$0xff]  }
  0x5b   : > { %v202_v16 = vld [vmem:[%s2782_s7] sm:$0xff]  ;;  %v2387_v19 = vld [vmem:[#allocation5 + $0x8] ss:$56 sps:$4 sm:$0xff]   ;;  %v2388_v20 = vld [vmem:[#allocation5 + $0xc] ss:$56 sps:$4 sm:$0xff]   ;;  %s1901_s4 = sshll.u32 %s2661_s16, 7 }
  0x5c   : > { %2033 = vmatpush3.bf16.msra.mxu0 %v2373_v3  ;;  %2053 = vmatpush3.bf16.msra.mxu1 %v2374_v4  ;;  %v2813_v18 = vpack.c.bf16 %v202_v16, %v202_v16  ;;  %v2389_v21 = vld [vmem:[#allocation5 + $0x78] ss:$56 sps:$4 sm:$0xff]   ;;  %v2390_v22 = vld [vmem:[#allocation5 + $0x7c] ss:$56 sps:$4 sm:$0xff]   ;;  %v2391_v23 = vld [vmem:[#allocation5 + $0xe8] ss:$56 sps:$4 sm:$0xff]   ;;  %s2958_s9 = scalar_lea.hbm %s3005_s3, %s1901_s4 }
  0x5d   : > { %2034 = vmatprep.subr.bf16.mxu0 %v2617_v0  ;;  %2054 = vmatprep.subr.bf16.mxu1 %v2617_v0  ;;  %v2392_v24 = vld [vmem:[#allocation5 + $0xec] ss:$56 sps:$4 sm:$0xff]   ;;  %v2393_v25 = vld [vmem:[#allocation5 + $0x158] ss:$56 sps:$4 sm:$0xff]   ;;  %v2394_v26 = vld [vmem:[#allocation5 + $0x15c] ss:$56 sps:$4 sm:$0xff]  }
  0x5e   : > { %v2395_v27 = vld [vmem:[#allocation5 + $0x1c8] ss:$56 sps:$4 sm:$0xff]   ;;  %v2396_v28 = vld [vmem:[#allocation5 + $0x1cc] ss:$56 sps:$4 sm:$0xff]   ;;  %v2397_v29 = vld [vmem:[#allocation5 + $0x238] ss:$56 sps:$4 sm:$0xff]  }
  0x5f   : > { %v2398_v30 = vld [vmem:[#allocation5 + $0x23c] ss:$56 sps:$4 sm:$0xff]   ;;  %v2399_v31 = vld [vmem:[#allocation5 + $0x2a8] ss:$56 sps:$4 sm:$0xff]   ;;  %v2400_v32 = vld [vmem:[#allocation5 + $0x2ac] ss:$56 sps:$4 sm:$0xff]  }
  0x60   : > { %2035 = vmatpush3.bf16.msra.mxu0 %v2375_v5  ;;  %2055 = vmatpush3.bf16.msra.mxu1 %v2376_v6  ;;  %v2401_v33 = vld [vmem:[#allocation5 + $0x318] ss:$56 sps:$4 sm:$0xff]   ;;  %v2402_v34 = vld [vmem:[#allocation5 + $0x31c] ss:$56 sps:$4 sm:$0xff]   ;;  %v2421_v53 = vld [vmem:[#allocation5 + $0x88] ss:$56 sps:$4 sm:$0xff]  }
  0x61   : > { %2036 = vmatprep.subr.bf16.mxu0 %v2617_v0  ;;  %2056 = vmatprep.subr.bf16.mxu1 %v2617_v0  ;;  %v2403_v35 = vld [vmem:[#allocation5 + $0x10] ss:$56 sps:$4 sm:$0xff]   ;;  %v2404_v36 = vld [vmem:[#allocation5 + $0x14] ss:$56 sps:$4 sm:$0xff]   ;;  %v2405_v37 = vld [vmem:[#allocation5 + $0x80] ss:$56 sps:$4 sm:$0xff]  }
  0x62   : > { %v2406_v38 = vld [vmem:[#allocation5 + $0x84] ss:$56 sps:$4 sm:$0xff]   ;;  %v2407_v39 = vld [vmem:[#allocation5 + $0xf0] ss:$56 sps:$4 sm:$0xff]   ;;  %v2408_v40 = vld [vmem:[#allocation5 + $0xf4] ss:$56 sps:$4 sm:$0xff]  }
  0x63   : > { %v2409_v41 = vld [vmem:[#allocation5 + $0x160] ss:$56 sps:$4 sm:$0xff]   ;;  %v2410_v42 = vld [vmem:[#allocation5 + $0x164] ss:$56 sps:$4 sm:$0xff]   ;;  %v2411_v43 = vld [vmem:[#allocation5 + $0x1d0] ss:$56 sps:$4 sm:$0xff]  }
  0x64   : > { %2037 = vmatpush3.bf16.msra.mxu0 %v2377_v7  ;;  %2057 = vmatpush3.bf16.msra.mxu1 %v2378_v8  ;;  %v2412_v44 = vld [vmem:[#allocation5 + $0x1d4] ss:$56 sps:$4 sm:$0xff]   ;;  %v2413_v45 = vld [vmem:[#allocation5 + $0x240] ss:$56 sps:$4 sm:$0xff]   ;;  %v2414_v46 = vld [vmem:[#allocation5 + $0x244] ss:$56 sps:$4 sm:$0xff]  }
  0x65   : > { %2038 = vmatprep.subr.bf16.mxu0 %v2617_v0  ;;  %2058 = vmatprep.subr.bf16.mxu1 %v2617_v0  ;;  %v2415_v47 = vld [vmem:[#allocation5 + $0x2b0] ss:$56 sps:$4 sm:$0xff]   ;;  %v2416_v48 = vld [vmem:[#allocation5 + $0x2b4] ss:$56 sps:$4 sm:$0xff]   ;;  %v2417_v49 = vld [vmem:[#allocation5 + $0x320] ss:$56 sps:$4 sm:$0xff]  }
  0x66   : > { %v2418_v50 = vld [vmem:[#allocation5 + $0x324] ss:$56 sps:$4 sm:$0xff]   ;;  %v2419_v51 = vld [vmem:[#allocation5 + $0x18] ss:$56 sps:$4 sm:$0xff]   ;;  %v2425_v57 = vld [vmem:[#allocation5 + $0x168] ss:$56 sps:$4 sm:$0xff]  }
  0x67   : > { %v2420_v52 = vld [vmem:[#allocation5 + $0x1c] ss:$56 sps:$4 sm:$0xff]   ;;  %v2422_v54 = vld [vmem:[#allocation5 + $0x8c] ss:$56 sps:$4 sm:$0xff]   ;;  %v2423_v55 = vld [vmem:[#allocation5 + $0xf8] ss:$56 sps:$4 sm:$0xff]  }
  0x68   : > { %2039 = vmatpush3.bf16.msra.mxu0 %v2379_v9  ;;  %2059 = vmatpush3.bf16.msra.mxu1 %v2380_v10  ;;  %v2424_v56 = vld [vmem:[#allocation5 + $0xfc] ss:$56 sps:$4 sm:$0xff]   ;;  %v2426_v58 = vld [vmem:[#allocation5 + $0x16c] ss:$56 sps:$4 sm:$0xff]   ;;  %v2427_v59 = vld [vmem:[#allocation5 + $0x1d8] ss:$56 sps:$4 sm:$0xff]  }
  0x69   : > { %2040 = vmatprep.subr.bf16.mxu0 %v2617_v0  ;;  %2060 = vmatprep.subr.bf16.mxu1 %v2617_v0  ;;  %v2428_v60 = vld [vmem:[#allocation5 + $0x1dc] ss:$56 sps:$4 sm:$0xff]   ;;  %v2429_v61 = vld [vmem:[#allocation5 + $0x248] ss:$56 sps:$4 sm:$0xff]   ;;  %v2430_v62 = vld [vmem:[#allocation5 + $0x24c] ss:$56 sps:$4 sm:$0xff]  }
  0x6a   : > { %v2431_v63 = vld [vmem:[#allocation5 + $0x2b8] ss:$56 sps:$4 sm:$0xff]   ;;  %v2432_v1 = vld [vmem:[#allocation5 + $0x2bc] ss:$56 sps:$4 sm:$0xff]   ;;  %v2433_v2 = vld [vmem:[#allocation5 + $0x328] ss:$56 sps:$4 sm:$0xff]  }
  0x6b   : > { %v2434_v3 = vld [vmem:[#allocation5 + $0x32c] ss:$56 sps:$4 sm:$0xff]   ;;  %v2435_v4 = vld [vmem:[#allocation5 + $0x20] ss:$56 sps:$4 sm:$0xff]   ;;  %v2437_v6 = vld [vmem:[#allocation5 + $0x90] ss:$56 sps:$4 sm:$0xff]  }
  0x6c   : > { %2041 = vmatpush3.bf16.msra.mxu0 %v2381_v11  ;;  %2061 = vmatpush3.bf16.msra.mxu1 %v2382_v12  ;;  %v2436_v5 = vld [vmem:[#allocation5 + $0x24] ss:$56 sps:$4 sm:$0xff]   ;;  %v2438_v7 = vld [vmem:[#allocation5 + $0x94] ss:$56 sps:$4 sm:$0xff]   ;;  %v2439_v8 = vld [vmem:[#allocation5 + $0x100] ss:$56 sps:$4 sm:$0xff]  }
  0x6d   : > { %2042 = vmatprep.subr.bf16.mxu0 %v2617_v0  ;;  %2062 = vmatprep.subr.bf16.mxu1 %v2617_v0  ;;  %v2440_v9 = vld [vmem:[#allocation5 + $0x104] ss:$56 sps:$4 sm:$0xff]   ;;  %v2441_v10 = vld [vmem:[#allocation5 + $0x170] ss:$56 sps:$4 sm:$0xff]   ;;  %v2442_v11 = vld [vmem:[#allocation5 + $0x174] ss:$56 sps:$4 sm:$0xff]  }
  0x6e   : > { %v2443_v12 = vld [vmem:[#allocation5 + $0x1e0] ss:$56 sps:$4 sm:$0xff]   ;;  %s200_s25 = scalar_lea.vmem [#allocation7], %s1784_s22  ;;  %s1684_s10 = scalar_lea.sflag [#allocation4], %s2776_s30 }
  0x6f   : > { %v2447_v16 = vld [vmem:[#allocation5 + $0x2c0] ss:$56 sps:$4 sm:$0xff]   ;;  %s1697_s26 = sshll.u32 %s200_s25, 4  ;;  %s2619_s16 = smov [#allocation7]   ;;  %s2960_s26 = int_to_ptr.vmem [resolvable:$true] %s1697_s26 }
  0x70   : > { %2043 = vmatpush3.bf16.msra.mxu0 %v2383_v13  ;;  %2063 = vmatpush3.bf16.msra.mxu1 %v2384_v14  ;;  %v2444_v13 = vld [vmem:[#allocation5 + $0x1e4] ss:$56 sps:$4 sm:$0xff]   ;;  %v2445_v14 = vld [vmem:[#allocation5 + $0x250] ss:$56 sps:$4 sm:$0xff]   ;;  %s2541_s11 = scalar_lea.vmem %s2960_s26, 128  ;;  %s2545_s27 = sshll.u32 %s2619_s16, 4  ;;  %s2546_s27 = int_to_ptr.vmem [resolvable:$false] %s2545_s27 }
  0x71   : > { %2044 = vmatprep.subr.bf16.mxu0 %v2617_v0  ;;  %2064 = vmatprep.subr.bf16.mxu1 %v2617_v0  ;;  %p2542_p4 = scmp.ne.s32.totalorder %s2960_s26, %s2541_s11  ;;  %s2547_s28 = scalar_lea.vmem %s2546_s27, 256 }
  0x72   : > { %p2548_p10 = scmp.lt.s32.totalorder %s2960_s26, %s2546_s27  ;;  %p2549_p13 = scmp.lt.s32.totalorder %s2547_s28, %s2541_s11 }
  0x73   : > { %p2543_p6 = pnand %p2542_p4, %p2731_p12 }
  0x74   : > { %2045 = vmatpush3.bf16.msra.mxu0 %v2385_v15  ;;  %2065 = vmatpush3.bf16.msra.mxu1 %v2386_v17  ;;  %v2446_v15 = vld [vmem:[#allocation5 + $0x254] ss:$56 sps:$4 sm:$0xff]   ;;  %v2448_v17 = vld [vmem:[#allocation5 + $0x2c4] ss:$56 sps:$4 sm:$0xff]   ;;  %p2550_p3 = por %p2549_p13, %p2548_p10 }
  0x75   : > { %2070 = vmatprep.subr.bf16.mxu0 %v2617_v0  ;;  %2090 = vmatprep.subr.bf16.mxu1 %v2617_v0  ;;  %p2544_p8 = pneg %p2543_p6 }
  0x77   : > { %2047 = vmatmul.mubr.bf16.vlgmr.msra.gmra.mrb[0].mxu0 %v2813_v18  ;;  %2067 = vmatmul.mubr.bf16.vlgmr.msra.gmra.mrb[0].mxu1 %v2813_v18  ;;  %p2551_p7 = pnand %p2550_p3, %p2544_p8 }
  0x78   : > { %2071 = vmatpush3.bf16.msra.mxu0 %v2387_v19  ;;  %2091 = vmatpush3.bf16.msra.mxu1 %v2388_v20  ;;  %v2449_v19 = vld [vmem:[#allocation5 + $0x330] ss:$56 sps:$4 sm:$0xff]   ;;  %v2450_v20 = vld [vmem:[#allocation5 + $0x334] ss:$56 sps:$4 sm:$0xff]  }
  0x79   : > { %2072 = vmatprep.subr.bf16.mxu0 %v2617_v0  ;;  %2092 = vmatprep.subr.bf16.mxu1 %v2617_v0 }
  0x7a   : > { %2086 = vmatprep.mubr.msk.bf16.mxu0 %vm2618_vm0, %v2617_v0  ;;  %2106 = vmatprep.mubr.msk.bf16.mxu1 %vm2618_vm0, %v2617_v0 }
  0x7c   : > { %2073 = vmatpush3.bf16.msra.mxu0 %v2389_v21  ;;  %2093 = vmatpush3.bf16.msra.mxu1 %v2390_v22  ;;  %v2451_v21 = vld [vmem:[#allocation5 + $0x28] ss:$56 sps:$4 sm:$0xff]   ;;  %v2452_v22 = vld [vmem:[#allocation5 + $0x2c] ss:$56 sps:$4 sm:$0xff]  }
  0x7d   : > { %2074 = vmatprep.subr.bf16.mxu0 %v2617_v0  ;;  %2094 = vmatprep.subr.bf16.mxu1 %v2617_v0 }
  0x80   : > { %2075 = vmatpush3.bf16.msra.mxu0 %v2391_v23  ;;  %2095 = vmatpush3.bf16.msra.mxu1 %v2392_v24  ;;  %v2453_v23 = vld [vmem:[#allocation5 + $0x98] ss:$56 sps:$4 sm:$0xff]   ;;  %v2454_v24 = vld [vmem:[#allocation5 + $0x9c] ss:$56 sps:$4 sm:$0xff]  }
  0x81   : > { %2076 = vmatprep.subr.bf16.mxu0 %v2617_v0  ;;  %2096 = vmatprep.subr.bf16.mxu1 %v2617_v0 }
  0x84   : > { %2077 = vmatpush3.bf16.msra.mxu0 %v2393_v25  ;;  %2097 = vmatpush3.bf16.msra.mxu1 %v2394_v26  ;;  %v2455_v25 = vld [vmem:[#allocation5 + $0x108] ss:$56 sps:$4 sm:$0xff]   ;;  %v2456_v26 = vld [vmem:[#allocation5 + $0x10c] ss:$56 sps:$4 sm:$0xff]  }
  0x85   : > { %2078 = vmatprep.subr.bf16.mxu0 %v2617_v0  ;;  %2098 = vmatprep.subr.bf16.mxu1 %v2617_v0 }
  0x88   : > { %2079 = vmatpush3.bf16.msra.mxu0 %v2395_v27  ;;  %2099 = vmatpush3.bf16.msra.mxu1 %v2396_v28  ;;  %v2457_v27 = vld [vmem:[#allocation5 + $0x178] ss:$56 sps:$4 sm:$0xff]   ;;  %v2458_v28 = vld [vmem:[#allocation5 + $0x17c] ss:$56 sps:$4 sm:$0xff]  }
  0x89   : > { %2080 = vmatprep.subr.bf16.mxu0 %v2617_v0  ;;  %2100 = vmatprep.subr.bf16.mxu1 %v2617_v0 }
  0x8c   : > { %2081 = vmatpush3.bf16.msra.mxu0 %v2397_v29  ;;  %2101 = vmatpush3.bf16.msra.mxu1 %v2398_v30  ;;  %v2459_v29 = vld [vmem:[#allocation5 + $0x1e8] ss:$56 sps:$4 sm:$0xff]   ;;  %v2460_v30 = vld [vmem:[#allocation5 + $0x1ec] ss:$56 sps:$4 sm:$0xff]  }
  0x8d   : > { %2082 = vmatprep.subr.bf16.mxu0 %v2617_v0  ;;  %2102 = vmatprep.subr.bf16.mxu1 %v2617_v0 }
  0x90   : > { %2083 = vmatpush3.bf16.msra.mxu0 %v2399_v31  ;;  %2103 = vmatpush3.bf16.msra.mxu1 %v2400_v32  ;;  %v2461_v31 = vld [vmem:[#allocation5 + $0x258] ss:$56 sps:$4 sm:$0xff]   ;;  %v2462_v32 = vld [vmem:[#allocation5 + $0x25c] ss:$56 sps:$4 sm:$0xff]  }
  0x91   : > { %2084 = vmatprep.subr.bf16.mxu0 %v2617_v0  ;;  %2104 = vmatprep.subr.bf16.mxu1 %v2617_v0 }
  0x94   : > { %2085 = vmatpush3.bf16.msra.mxu0 %v2401_v33  ;;  %2105 = vmatpush3.bf16.msra.mxu1 %v2402_v34  ;;  %v2463_v33 = vld [vmem:[#allocation5 + $0x2c8] ss:$56 sps:$4 sm:$0xff]   ;;  %v2464_v34 = vld [vmem:[#allocation5 + $0x2cc] ss:$56 sps:$4 sm:$0xff]  }
  0x95   : > { %2110 = vmatprep.subr.bf16.mxu0 %v2617_v0  ;;  %2130 = vmatprep.subr.bf16.mxu1 %v2617_v0 }
  0x97   : > { %2087 = vmatmul.mubr.bf16.vlgmr.msra.gmra.mrb[4].mxu0 %v2813_v18  ;;  %2107 = vmatmul.mubr.bf16.vlgmr.msra.gmra.mrb[4].mxu1 %v2813_v18 }
  0x98   : > { %2111 = vmatpush3.bf16.msra.mxu0 %v2403_v35  ;;  %2131 = vmatpush3.bf16.msra.mxu1 %v2404_v36  ;;  %v2465_v35 = vld [vmem:[#allocation5 + $0x338] ss:$56 sps:$4 sm:$0xff]   ;;  %v2466_v36 = vld [vmem:[#allocation5 + $0x33c] ss:$56 sps:$4 sm:$0xff]  }
  0x99   : > { %2112 = vmatprep.subr.bf16.mxu0 %v2617_v0  ;;  %2132 = vmatprep.subr.bf16.mxu1 %v2617_v0 }
  0x9a   : > { %2126 = vmatprep.mubr.msk.bf16.mxu0 %vm2618_vm0, %v2617_v0  ;;  %2146 = vmatprep.mubr.msk.bf16.mxu1 %vm2618_vm0, %v2617_v0 }
  0x9c   : > { %2113 = vmatpush3.bf16.msra.mxu0 %v2405_v37  ;;  %2133 = vmatpush3.bf16.msra.mxu1 %v2406_v38  ;;  %v2467_v37 = vld [vmem:[#allocation5 + $0x30] ss:$56 sps:$4 sm:$0xff]   ;;  %v2468_v38 = vld [vmem:[#allocation5 + $0x34] ss:$56 sps:$4 sm:$0xff]  }
  0x9d   : > { %2114 = vmatprep.subr.bf16.mxu0 %v2617_v0  ;;  %2134 = vmatprep.subr.bf16.mxu1 %v2617_v0 }
  0xa0   : > { %2115 = vmatpush3.bf16.msra.mxu0 %v2407_v39  ;;  %2135 = vmatpush3.bf16.msra.mxu1 %v2408_v40  ;;  %v2469_v39 = vld [vmem:[#allocation5 + $0xa0] ss:$56 sps:$4 sm:$0xff]   ;;  %v2470_v40 = vld [vmem:[#allocation5 + $0xa4] ss:$56 sps:$4 sm:$0xff]  }
  0xa1   : > { %2116 = vmatprep.subr.bf16.mxu0 %v2617_v0  ;;  %2136 = vmatprep.subr.bf16.mxu1 %v2617_v0 }
  0xa4   : > { %2117 = vmatpush3.bf16.msra.mxu0 %v2409_v41  ;;  %2137 = vmatpush3.bf16.msra.mxu1 %v2410_v42  ;;  %v2471_v41 = vld [vmem:[#allocation5 + $0x110] ss:$56 sps:$4 sm:$0xff]   ;;  %v2472_v42 = vld [vmem:[#allocation5 + $0x114] ss:$56 sps:$4 sm:$0xff]  }
  0xa5   : > { %2118 = vmatprep.subr.bf16.mxu0 %v2617_v0  ;;  %2138 = vmatprep.subr.bf16.mxu1 %v2617_v0 }
  0xa8   : > { %2119 = vmatpush3.bf16.msra.mxu0 %v2411_v43  ;;  %2139 = vmatpush3.bf16.msra.mxu1 %v2412_v44  ;;  %v2473_v43 = vld [vmem:[#allocation5 + $0x180] ss:$56 sps:$4 sm:$0xff]   ;;  %v2474_v44 = vld [vmem:[#allocation5 + $0x184] ss:$56 sps:$4 sm:$0xff]  }
  0xa9   : > { %2120 = vmatprep.subr.bf16.mxu0 %v2617_v0  ;;  %2140 = vmatprep.subr.bf16.mxu1 %v2617_v0 }
  0xac   : > { %2121 = vmatpush3.bf16.msra.mxu0 %v2413_v45  ;;  %2141 = vmatpush3.bf16.msra.mxu1 %v2414_v46  ;;  %v2475_v45 = vld [vmem:[#allocation5 + $0x1f0] ss:$56 sps:$4 sm:$0xff]   ;;  %v2476_v46 = vld [vmem:[#allocation5 + $0x1f4] ss:$56 sps:$4 sm:$0xff]  }
  0xad   : > { %2122 = vmatprep.subr.bf16.mxu0 %v2617_v0  ;;  %2142 = vmatprep.subr.bf16.mxu1 %v2617_v0 }
  0xb0   : > { %2123 = vmatpush3.bf16.msra.mxu0 %v2415_v47  ;;  %2143 = vmatpush3.bf16.msra.mxu1 %v2416_v48  ;;  %v2477_v47 = vld [vmem:[#allocation5 + $0x260] ss:$56 sps:$4 sm:$0xff]   ;;  %v2478_v48 = vld [vmem:[#allocation5 + $0x264] ss:$56 sps:$4 sm:$0xff]  }
  0xb1   : > { %2124 = vmatprep.subr.bf16.mxu0 %v2617_v0  ;;  %2144 = vmatprep.subr.bf16.mxu1 %v2617_v0 }
  0xb4   : > { %2125 = vmatpush3.bf16.msra.mxu0 %v2417_v49  ;;  %2145 = vmatpush3.bf16.msra.mxu1 %v2418_v50  ;;  %v2479_v49 = vld [vmem:[#allocation5 + $0x2d0] ss:$56 sps:$4 sm:$0xff]   ;;  %v2480_v50 = vld [vmem:[#allocation5 + $0x2d4] ss:$56 sps:$4 sm:$0xff]  }
  0xb5   : > { %2150 = vmatprep.subr.bf16.mxu0 %v2617_v0  ;;  %2170 = vmatprep.subr.bf16.mxu1 %v2617_v0 }
  0xb7   : > { %2127 = vmatmul.mubr.bf16.vlgmr.msra.gmra.mrb[8].mxu0 %v2813_v18  ;;  %2147 = vmatmul.mubr.bf16.vlgmr.msra.gmra.mrb[8].mxu1 %v2813_v18 }
  0xb8   : > { %2151 = vmatpush3.bf16.msra.mxu0 %v2419_v51  ;;  %2171 = vmatpush3.bf16.msra.mxu1 %v2420_v52  ;;  %v2481_v51 = vld [vmem:[#allocation5 + $0x340] ss:$56 sps:$4 sm:$0xff]   ;;  %v2482_v52 = vld [vmem:[#allocation5 + $0x344] ss:$56 sps:$4 sm:$0xff]  }
  0xb9   : > { %2152 = vmatprep.subr.bf16.mxu0 %v2617_v0  ;;  %2172 = vmatprep.subr.bf16.mxu1 %v2617_v0 }
  0xba   : > { %2166 = vmatprep.mubr.msk.bf16.mxu0 %vm2618_vm0, %v2617_v0  ;;  %2186 = vmatprep.mubr.msk.bf16.mxu1 %vm2618_vm0, %v2617_v0 }
  0xbc   : > { %2153 = vmatpush3.bf16.msra.mxu0 %v2421_v53  ;;  %2173 = vmatpush3.bf16.msra.mxu1 %v2422_v54 }
  0xbd   : > { %2154 = vmatprep.subr.bf16.mxu0 %v2617_v0  ;;  %2174 = vmatprep.subr.bf16.mxu1 %v2617_v0 }
  0xc0   : > { %2155 = vmatpush3.bf16.msra.mxu0 %v2423_v55  ;;  %2175 = vmatpush3.bf16.msra.mxu1 %v2424_v56 }
  0xc1   : > { %2156 = vmatprep.subr.bf16.mxu0 %v2617_v0  ;;  %2176 = vmatprep.subr.bf16.mxu1 %v2617_v0 }
  0xc4   : > { %2157 = vmatpush3.bf16.msra.mxu0 %v2425_v57  ;;  %2177 = vmatpush3.bf16.msra.mxu1 %v2426_v58 }
  0xc5   : > { %2158 = vmatprep.subr.bf16.mxu0 %v2617_v0  ;;  %2178 = vmatprep.subr.bf16.mxu1 %v2617_v0 }
  0xc8   : > { %2159 = vmatpush3.bf16.msra.mxu0 %v2427_v59  ;;  %2179 = vmatpush3.bf16.msra.mxu1 %v2428_v60 }
  0xc9   : > { %2160 = vmatprep.subr.bf16.mxu0 %v2617_v0  ;;  %2180 = vmatprep.subr.bf16.mxu1 %v2617_v0 }
  0xcc   : > { %2161 = vmatpush3.bf16.msra.mxu0 %v2429_v61  ;;  %2181 = vmatpush3.bf16.msra.mxu1 %v2430_v62 }
  0xcd   : > { %2162 = vmatprep.subr.bf16.mxu0 %v2617_v0  ;;  %2182 = vmatprep.subr.bf16.mxu1 %v2617_v0 }
  0xd0   : > { %2163 = vmatpush3.bf16.msra.mxu0 %v2431_v63  ;;  %2183 = vmatpush3.bf16.msra.mxu1 %v2432_v1 }
  0xd1   : > { %2164 = vmatprep.subr.bf16.mxu0 %v2617_v0  ;;  %2184 = vmatprep.subr.bf16.mxu1 %v2617_v0 }
  0xd4   : > { %2165 = vmatpush3.bf16.msra.mxu0 %v2433_v2  ;;  %2185 = vmatpush3.bf16.msra.mxu1 %v2434_v3 }
  0xd5   : > { %2190 = vmatprep.subr.bf16.mxu0 %v2617_v0  ;;  %2210 = vmatprep.subr.bf16.mxu1 %v2617_v0 }
  0xd7   : > { %2167 = vmatmul.mubr.bf16.vlgmr.msra.gmra.mrb[12].mxu0 %v2813_v18  ;;  %2187 = vmatmul.mubr.bf16.vlgmr.msra.gmra.mrb[12].mxu1 %v2813_v18 }
  0xd8   : > { %2191 = vmatpush3.bf16.msra.mxu0 %v2435_v4  ;;  %2211 = vmatpush3.bf16.msra.mxu1 %v2436_v5 }
  0xd9   : > { %2192 = vmatprep.subr.bf16.mxu0 %v2617_v0  ;;  %2212 = vmatprep.subr.bf16.mxu1 %v2617_v0 }
  0xda   : > { %2206 = vmatprep.mubr.msk.bf16.mxu0 %vm2618_vm0, %v2617_v0  ;;  %2226 = vmatprep.mubr.msk.bf16.mxu1 %vm2618_vm0, %v2617_v0 }
  0xdc   : > { %2193 = vmatpush3.bf16.msra.mxu0 %v2437_v6  ;;  %2213 = vmatpush3.bf16.msra.mxu1 %v2438_v7 }
  0xdd   : > { %2194 = vmatprep.subr.bf16.mxu0 %v2617_v0  ;;  %2214 = vmatprep.subr.bf16.mxu1 %v2617_v0 }
  0xe0   : > { %2195 = vmatpush3.bf16.msra.mxu0 %v2439_v8  ;;  %2215 = vmatpush3.bf16.msra.mxu1 %v2440_v9 }
  0xe1   : > { %2196 = vmatprep.subr.bf16.mxu0 %v2617_v0  ;;  %2216 = vmatprep.subr.bf16.mxu1 %v2617_v0 }
  0xe4   : > { %2197 = vmatpush3.bf16.msra.mxu0 %v2441_v10  ;;  %2217 = vmatpush3.bf16.msra.mxu1 %v2442_v11 }
  0xe5   : > { %2198 = vmatprep.subr.bf16.mxu0 %v2617_v0  ;;  %2218 = vmatprep.subr.bf16.mxu1 %v2617_v0 }
  0xe8   : > { %2199 = vmatpush3.bf16.msra.mxu0 %v2443_v12  ;;  %2219 = vmatpush3.bf16.msra.mxu1 %v2444_v13 }
  0xe9   : > { %2200 = vmatprep.subr.bf16.mxu0 %v2617_v0  ;;  %2220 = vmatprep.subr.bf16.mxu1 %v2617_v0 }
  0xec   : > { %2201 = vmatpush3.bf16.msra.mxu0 %v2445_v14  ;;  %2221 = vmatpush3.bf16.msra.mxu1 %v2446_v15 }
  0xed   : > { %2202 = vmatprep.subr.bf16.mxu0 %v2617_v0  ;;  %2222 = vmatprep.subr.bf16.mxu1 %v2617_v0 }
  0xf0   : > { %2203 = vmatpush3.bf16.msra.mxu0 %v2447_v16  ;;  %2223 = vmatpush3.bf16.msra.mxu1 %v2448_v17 }
  0xf1   : > { %2204 = vmatprep.subr.bf16.mxu0 %v2617_v0  ;;  %2224 = vmatprep.subr.bf16.mxu1 %v2617_v0 }
  0xf4   : > { %2205 = vmatpush3.bf16.msra.mxu0 %v2449_v19  ;;  %2225 = vmatpush3.bf16.msra.mxu1 %v2450_v20 }
  0xf5   : > { %2230 = vmatprep.subr.bf16.mxu0 %v2617_v0  ;;  %2250 = vmatprep.subr.bf16.mxu1 %v2617_v0 }
  0xf7   : > { %2207 = vmatmul.mubr.bf16.vlgmr.msra.gmra.mrb[16].mxu0 %v2813_v18  ;;  %2227 = vmatmul.mubr.bf16.vlgmr.msra.gmra.mrb[16].mxu1 %v2813_v18 }
  0xf8   : > { %2231 = vmatpush3.bf16.msra.mxu0 %v2451_v21  ;;  %2251 = vmatpush3.bf16.msra.mxu1 %v2452_v22 }
  0xf9   : > { %2232 = vmatprep.subr.bf16.mxu0 %v2617_v0  ;;  %2252 = vmatprep.subr.bf16.mxu1 %v2617_v0 }
  0xfa   : > { %2246 = vmatprep.mubr.msk.bf16.mxu0 %vm2618_vm0, %v2617_v0  ;;  %2266 = vmatprep.mubr.msk.bf16.mxu1 %vm2618_vm0, %v2617_v0 }
  0xfc   : > { %2233 = vmatpush3.bf16.msra.mxu0 %v2453_v23  ;;  %2253 = vmatpush3.bf16.msra.mxu1 %v2454_v24 }
  0xfd   : > { %2234 = vmatprep.subr.bf16.mxu0 %v2617_v0  ;;  %2254 = vmatprep.subr.bf16.mxu1 %v2617_v0 }
 0x100   : > { %2235 = vmatpush3.bf16.msra.mxu0 %v2455_v25  ;;  %2255 = vmatpush3.bf16.msra.mxu1 %v2456_v26 }
 0x101   : > { %2236 = vmatprep.subr.bf16.mxu0 %v2617_v0  ;;  %2256 = vmatprep.subr.bf16.mxu1 %v2617_v0 }
 0x104   : > { %2237 = vmatpush3.bf16.msra.mxu0 %v2457_v27  ;;  %2257 = vmatpush3.bf16.msra.mxu1 %v2458_v28 }
 0x105   : > { %2238 = vmatprep.subr.bf16.mxu0 %v2617_v0  ;;  %2258 = vmatprep.subr.bf16.mxu1 %v2617_v0 }
 0x108   : > { %2239 = vmatpush3.bf16.msra.mxu0 %v2459_v29  ;;  %2259 = vmatpush3.bf16.msra.mxu1 %v2460_v30 }
 0x109   : > { %2240 = vmatprep.subr.bf16.mxu0 %v2617_v0  ;;  %2260 = vmatprep.subr.bf16.mxu1 %v2617_v0 }
 0x10c   : > { %2241 = vmatpush3.bf16.msra.mxu0 %v2461_v31  ;;  %2261 = vmatpush3.bf16.msra.mxu1 %v2462_v32 }
 0x10d   : > { %2242 = vmatprep.subr.bf16.mxu0 %v2617_v0  ;;  %2262 = vmatprep.subr.bf16.mxu1 %v2617_v0 }
 0x110   : > { %2243 = vmatpush3.bf16.msra.mxu0 %v2463_v33  ;;  %2263 = vmatpush3.bf16.msra.mxu1 %v2464_v34 }
 0x111   : > { %2244 = vmatprep.subr.bf16.mxu0 %v2617_v0  ;;  %2264 = vmatprep.subr.bf16.mxu1 %v2617_v0 }
 0x114   : > { %2245 = vmatpush3.bf16.msra.mxu0 %v2465_v35  ;;  %2265 = vmatpush3.bf16.msra.mxu1 %v2466_v36 }
 0x115   : > { %2270 = vmatprep.subr.bf16.mxu0 %v2617_v0  ;;  %2290 = vmatprep.subr.bf16.mxu1 %v2617_v0 }
 0x117   : > { %2247 = vmatmul.mubr.bf16.vlgmr.msra.gmra.mrb[20].mxu0 %v2813_v18  ;;  %2267 = vmatmul.mubr.bf16.vlgmr.msra.gmra.mrb[20].mxu1 %v2813_v18 }
 0x118   : > { %2271 = vmatpush3.bf16.msra.mxu0 %v2467_v37  ;;  %2291 = vmatpush3.bf16.msra.mxu1 %v2468_v38 }
 0x119   : > { %2272 = vmatprep.subr.bf16.mxu0 %v2617_v0  ;;  %2292 = vmatprep.subr.bf16.mxu1 %v2617_v0 }
 0x11a   : > { %2286 = vmatprep.mubr.msk.bf16.mxu0 %vm2618_vm0, %v2617_v0  ;;  %2306 = vmatprep.mubr.msk.bf16.mxu1 %vm2618_vm0, %v2617_v0 }
 0x11c   : > { %2273 = vmatpush3.bf16.msra.mxu0 %v2469_v39  ;;  %2293 = vmatpush3.bf16.msra.mxu1 %v2470_v40 }
 0x11d   : > { %2274 = vmatprep.subr.bf16.mxu0 %v2617_v0  ;;  %2294 = vmatprep.subr.bf16.mxu1 %v2617_v0 }
 0x120   : > { %2275 = vmatpush3.bf16.msra.mxu0 %v2471_v41  ;;  %2295 = vmatpush3.bf16.msra.mxu1 %v2472_v42 }
 0x121   : > { %2276 = vmatprep.subr.bf16.mxu0 %v2617_v0  ;;  %2296 = vmatprep.subr.bf16.mxu1 %v2617_v0 }
 0x124   : > { %2277 = vmatpush3.bf16.msra.mxu0 %v2473_v43  ;;  %2297 = vmatpush3.bf16.msra.mxu1 %v2474_v44 }
 0x125   : > { %2278 = vmatprep.subr.bf16.mxu0 %v2617_v0  ;;  %2298 = vmatprep.subr.bf16.mxu1 %v2617_v0 }
 0x128   : > { %2279 = vmatpush3.bf16.msra.mxu0 %v2475_v45  ;;  %2299 = vmatpush3.bf16.msra.mxu1 %v2476_v46 }
 0x129   : > { %2280 = vmatprep.subr.bf16.mxu0 %v2617_v0  ;;  %2300 = vmatprep.subr.bf16.mxu1 %v2617_v0 }
 0x12c   : > { %2281 = vmatpush3.bf16.msra.mxu0 %v2477_v47  ;;  %2301 = vmatpush3.bf16.msra.mxu1 %v2478_v48 }
 0x12d   : > { %2282 = vmatprep.subr.bf16.mxu0 %v2617_v0  ;;  %2302 = vmatprep.subr.bf16.mxu1 %v2617_v0 }
 0x130   : > { %2283 = vmatpush3.bf16.msra.mxu0 %v2479_v49  ;;  %2303 = vmatpush3.bf16.msra.mxu1 %v2480_v50 }
 0x131   : > { %2284 = vmatprep.subr.bf16.mxu0 %v2617_v0  ;;  %2304 = vmatprep.subr.bf16.mxu1 %v2617_v0 }
 0x134   : > { %2285 = vmatpush3.bf16.msra.mxu0 %v2481_v51  ;;  %2305 = vmatpush3.bf16.msra.mxu1 %v2482_v52  ;;  %v1899_v52 = vld [vmem:[%s3004_s2] ss:$0 sm:$0xff] }
 0x137   : > { %2287 = vmatmul.mubr.bf16.vlgmr.msra.gmra.mrb[24].mxu0 %v2813_v18  ;;  %2307 = vmatmul.mubr.bf16.vlgmr.msra.gmra.mrb[24].mxu1 %v2813_v18 }
 0x14a   : > { %v302_v53 = vpop.f32.mrb[0].mxu0  ;;  %v406_v54 = vpop.f32.mrb[0].mxu1 }
 0x14b   : > { %v2048_v55 = vpop.f32.mrb[1].mxu0  ;;  %v412_v56 = vmax.f32 %v302_v53, %v406_v54  ;;  %v2068_v57 = vpop.f32.mrb[1].mxu1 }
 0x14c   : > { %v305_v58 = vpop.f32.mrb[2].mxu0  ;;  %v409_v59 = vpop.f32.mrb[2].mxu1 }
 0x14d   : > { %v2049_v60 = vpop.f32.mrb[3].mxu0  ;;  %v2069_v61 = vpop.f32.mrb[3].mxu1 }
 0x16a   : > { %v511_v62 = vpop.f32.mrb[4].mxu0  ;;  %v616_v1 = vpop.f32.mrb[4].mxu1 }
 0x16b   : > { %v517_v63 = vmax.f32 %v412_v56, %v511_v62  ;;  %v2088_v2 = vpop.f32.mrb[5].mxu0  ;;  %v2108_v0 = vpop.f32.mrb[5].mxu1 }
 0x16c   : > { %v514_v3 = vpop.f32.mrb[6].mxu0  ;;  %v619_v5 = vpop.f32.mrb[6].mxu1 }
 0x16d   : > { %v622_v4 = vmax.f32 %v517_v63, %v616_v1  ;;  %v2089_v6 = vpop.f32.mrb[7].mxu0  ;;  %v2109_v7 = vpop.f32.mrb[7].mxu1 }
 0x18a   : > { %v721_v18 = vpop.f32.mrb[8].mxu0  ;;  %v826_v9 = vpop.f32.mrb[8].mxu1 }
 0x18b   : > { %v727_v8 = vmax.f32 %v622_v4, %v721_v18  ;;  %v2128_v10 = vpop.f32.mrb[9].mxu0  ;;  %v2148_v11 = vpop.f32.mrb[9].mxu1 }
 0x18c   : > { %v724_v12 = vpop.f32.mrb[10].mxu0  ;;  %v829_v14 = vpop.f32.mrb[10].mxu1 }
 0x18d   : > { %v832_v13 = vmax.f32 %v727_v8, %v826_v9  ;;  %v2129_v15 = vpop.f32.mrb[11].mxu0  ;;  %v2149_v16 = vpop.f32.mrb[11].mxu1 }
 0x1aa   : > { %v931_v17 = vpop.f32.mrb[12].mxu0  ;;  %v1036_v20 = vpop.f32.mrb[12].mxu1 }
 0x1ab   : > { %v937_v19 = vmax.f32 %v832_v13, %v931_v17  ;;  %v2168_v21 = vpop.f32.mrb[13].mxu0  ;;  %v2188_v22 = vpop.f32.mrb[13].mxu1 }
 0x1ac   : > { %v934_v23 = vpop.f32.mrb[14].mxu0  ;;  %v1039_v25 = vpop.f32.mrb[14].mxu1 }
 0x1ad   : > { %v1042_v24 = vmax.f32 %v937_v19, %v1036_v20  ;;  %v2169_v26 = vpop.f32.mrb[15].mxu0  ;;  %v2189_v27 = vpop.f32.mrb[15].mxu1 }
 0x1ca   : > { %v1141_v28 = vpop.f32.mrb[16].mxu0  ;;  %v1246_v30 = vpop.f32.mrb[16].mxu1 }
 0x1cb   : > { %v1147_v29 = vmax.f32 %v1042_v24, %v1141_v28  ;;  %v2208_v31 = vpop.f32.mrb[17].mxu0  ;;  %v2228_v32 = vpop.f32.mrb[17].mxu1 }
 0x1cc   : > { %v1144_v33 = vpop.f32.mrb[18].mxu0  ;;  %v1249_v35 = vpop.f32.mrb[18].mxu1 }
 0x1cd   : > { %v1252_v34 = vmax.f32 %v1147_v29, %v1246_v30  ;;  %v2209_v36 = vpop.f32.mrb[19].mxu0  ;;  %v2229_v37 = vpop.f32.mrb[19].mxu1 }
 0x1ea   : > { %v1351_v38 = vpop.f32.mrb[20].mxu0  ;;  %v1456_v40 = vpop.f32.mrb[20].mxu1 }
 0x1eb   : > { %v1357_v39 = vmax.f32 %v1252_v34, %v1351_v38  ;;  %v2248_v41 = vpop.f32.mrb[21].mxu0  ;;  %v2268_v42 = vpop.f32.mrb[21].mxu1 }
 0x1ec   : > { %v1354_v43 = vpop.f32.mrb[22].mxu0  ;;  %v1459_v45 = vpop.f32.mrb[22].mxu1 }
 0x1ed   : > { %v1462_v44 = vmax.f32 %v1357_v39, %v1456_v40  ;;  %v2249_v46 = vpop.f32.mrb[23].mxu0  ;;  %v2269_v47 = vpop.f32.mrb[23].mxu1 }
 0x20a   : > { %v1561_v48 = vpop.f32.mrb[24].mxu0  ;;  %v1666_v50 = vpop.f32.mrb[24].mxu1 }
 0x20b   : > { %v1567_v49 = vmax.f32 %v1462_v44, %v1561_v48  ;;  %v2288_v51 = vpop.f32.mrb[25].mxu0  ;;  %v2308_v53 = vpop.f32.mrb[25].mxu1 }
 0x20c   : > { %v1564_v54 = vpop.f32.mrb[26].mxu0  ;;  %v1669_v56 = vpop.f32.mrb[26].mxu1 }
 0x20d   : > { %v1672_v55 = vmax.f32 %v1567_v49, %v1666_v50  ;;  %v2289_v57 = vpop.f32.mrb[27].mxu0  ;;  %v2309_v58 = vpop.f32.mrb[27].mxu1 }
 0x20f   : > { %v1680_v59 = vadd.f32 %v1899_v52, %v1672_v55 }
 0x211   : > { %v1681_v60 = vmax.f32 %v1680_v59, 0.0 }
 0x213   : > { %1682 = vst [vmem:[%s200_s25] sm:$0xff] %v1681_v60 }
 0x214   : > { %2554 = shalt.err (!%p2551_p7)
}
 0x215   : > { %s2555_s29 = scalar_lea.hbm %s2958_s9, 128  ;;  %s2559_s22 = scalar_lea.hbm %s3005_s3, 256 }
 0x216   : > { %p2556_p9 = scmp.ne.s32.totalorder %s2958_s9, %s2555_s29  ;;  %p2560_p0 = scmp.lt.u32.totalorder %s2958_s9, %s3005_s3 }
 0x217   : > { %p2561_p11 = scmp.lt.u32.totalorder %s2559_s22, %s2555_s29  ;;  %p2563_p4 = scmp.lt.u32.totalorder %s2555_s29, %s2958_s9 }
 0x218   : > { %p2557_p2 = pnand %p2556_p9, %p2731_p12 }
 0x219   : > { %p2562_p1 = por %p2561_p11, %p2560_p0 }
 0x21a   : > { %p2558_p5 = pneg %p2557_p2 }
 0x21b   : > { %p2564_p6 = por %p2563_p4, %p2562_p1 }
 0x21d   : > { %p2565_p8 = pnand %p2564_p6, %p2558_p5 }
 0x21f   : > { %2568 = shalt.err (!%p2565_p8)
}
 0x220   : > { %2316 = dma.vmem_to_hbm [thread:$0]  (%p2731_p12), %s2960_s26, 128, %s2958_s9, %s1684_s10  }
 0x221 PF: > { %s1709_s18 = sand.u32 1, %s2599_s12   ;;  %p3020_p10 = scmp.ne.s32.totalorder %s3010_s19, 0 }
 0x222   : > { %p3021_p13 = scmp.ge.s32.totalorder %s2611_s15, 2  ;;  %s1710_s20 = scalar_lea.sflag [#allocation4], %s1709_s18 }
 0x224   : > { %p2327_p3 = pnand %p3021_p13, %p3020_p10 }
 0x226   : > { %2594 = dma.done.wait (!%p2327_p3), %s1710_s20, 128  }
 0x227   : > { %2596 = vsyncadd (!%p2327_p3), %s1710_s20, 4294967168  ;;  %p17_p7 = scmp.ge.s32.totalorder %s2696_s24, 4   ;;  %s3022_s12 = smov %s2603_s13 }
 0x228   : > { %s3023_s13 = smov %s2607_s14  ;;  %s3024_s14 = smov %s2727_s17 }
 0x229   : > { %s3025_s15 = smov %s2696_s24  ;;  %19 = sbr.rel (!%p17_p7) target bundleno = 6 (0x6), region = 81 }
 0x230   :  { %1715 = vsyncpa [#allocation3], 1 }
 0x231   :  { %1717 = vsyncpa [#allocation3 + $0x1], 1 }
 0x232   :  { %1718 = vsyncpa [#allocation6], 1 }
 0x233   :  { %1719 = vsyncpa [#allocation4], 1 }
 0x234   :  { %1721 = vsyncpa [#allocation4 + $0x1], 1 }

</bundles_post_ra>
